<compile_context>
chip_gen: v7x
topology: tpu7x:2x2x1
jax: 0.10.0
libtpu: 0.0.40
codegen_flags: <defaults>
</compile_context>

<pallas_src>
import jax
import jax.numpy as jnp
from jax.experimental import pallas as pl
from jax.experimental.pallas import tpu as pltpu


def _softshrink(v, thr):
    return jnp.where(v > thr, v - thr,
                     jnp.where(v < -thr, v + thr, jnp.zeros_like(v)))


def _round_up(v, m):
    return (v + m - 1) // m * m


def _pad2d(a, rows, cols):
    pr, pc = rows - a.shape[0], cols - a.shape[1]
    if pr == 0 and pc == 0:
        return a
    return jnp.pad(a, ((0, pr), (0, pc)))


def _dyn_lora_kernel(x_ref, wt_ref, at_ref, bt_ref, bias_ref, o_ref, weff_ref):
    """Grid = (N tiles, M tiles, K tiles); K innermost.

    x_ref    [tm, tk]     bf16  activations
    wt_ref   [tk, tn]     bf16  W^T tile
    at_ref   [tk, r]      f32   softshrink(A)^T tile
    bt_ref   [r,  tn]     f32   scaling * softshrink(B)^T tile
    bias_ref [1,  tn]     f32
    o_ref    [tm, tn]     f32   output tile, resident across K (accumulator)
    weff_ref [nk, tk, tn] bf16  effective-weight cache for the current N tile
    """
    i = pl.program_id(1)          # M tile index
    k = pl.program_id(2)          # K tile index

    # Build the effective-weight tile once per (N, K) tile: it does not depend
    # on the M tile, so every M tile after the first reuses the cached copy.
    @pl.when(i == 0)
    def _():
        lora = jnp.dot(at_ref[...], bt_ref[...],
                       preferred_element_type=jnp.float32)      # rank-r matmul
        weff_ref[k] = (wt_ref[...].astype(jnp.float32)
                       + lora).astype(weff_ref.dtype)

    # First K step: seed the resident f32 output tile with the bias.
    @pl.when(k == 0)
    def _():
        o_ref[...] = jnp.broadcast_to(bias_ref[...], o_ref.shape)

    # Hot loop: one dense bf16 MXU matmul, f32 accumulation in place.
    o_ref[...] += jnp.dot(x_ref[...], weff_ref[k],
                          preferred_element_type=jnp.float32)


def prepare_dynamic_lora(w, b, lora_a, lora_b, threshold, *, r_max,
                         block_n=512, block_k=512):
    """One-time weight prep (softshrink, scaling, transpose, pad, bf16 cast).

    Call once per optimizer step and reuse the result across forward calls so
    the full weight matrix is not re-read/re-written in HBM on every call.
    """
    out_features, in_features = w.shape

    # Tile sizes: lane dims multiples of 128, capped by the padded problem.
    Np0 = _round_up(out_features, 128)
    Kp0 = _round_up(in_features, 128)
    tn = min(_round_up(block_n, 128), Np0)
    tk = min(_round_up(block_k, 128), Kp0)
    # v7x megacore: N is the only "parallel" grid axis (M carries the w_eff
    # cache), so split it into >= 2 tiles whenever out_features allows.
    if Np0 // tn < 2 and Np0 >= 256:
        tn = _round_up(Np0 // 2, 128)
    Np = _round_up(out_features, tn)
    Kp = _round_up(in_features, tk)

    # softshrink in f32 (F.softshrink requires lambd >= 0 -> clamp the learned
    # scalar); fold the 1/r_max scaling into B.  A^T/B^T are tiny ([K, r] and
    # [r, N]) so they stay f32 (negligible bandwidth, no bf16 VPU needed).
    thr = jnp.maximum(jnp.asarray(threshold, jnp.float32), 0.0)
    sa_t = _softshrink(lora_a.astype(jnp.float32), thr).T                # [K, r]
    sb_t = (_softshrink(lora_b.astype(jnp.float32), thr)
            * (1.0 / float(r_max))).T                                    # [r, N]

    wt = _pad2d(w.astype(jnp.float32).T, Kp, Np).astype(jnp.bfloat16)    # [Kp, Np]
    sa_t = _pad2d(sa_t, Kp, r_max)
    sb_t = _pad2d(sb_t, r_max, Np)
    bias = _pad2d(b.astype(jnp.float32).reshape(1, -1), 1, Np)

    return dict(wt=wt, sa_t=sa_t, sb_t=sb_t, bias=bias,
                in_features=in_features, out_features=out_features,
                r_max=int(r_max), tn=tn, tk=tk, Np=Np, Kp=Kp)


def _vmem_limit_bytes(tm, tn, tk, r, nk):
    need = (2 * tm * tk * 2        # x (bf16, double-buffered)
            + 2 * tk * tn * 2      # W^T (bf16)
            + 2 * tk * r * 4       # softshrink(A)^T (f32)
            + 2 * r * tn * 4       # scaled softshrink(B)^T (f32)
            + 2 * tn * 4           # bias (f32)
            + 2 * tm * tn * 4      # output tile (f32, accumulated in place)
            + nk * tk * tn * 2     # w_eff cache
            + (4 << 20))           # compiler-internal scratch headroom
    # Cap by physical VMEM (v5e/v6e: 128 MiB, v7x: 64 MiB) minus headroom.
    try:
        cap = pltpu.get_tpu_info().vmem_capacity_bytes - (16 << 20)
    except Exception:
        cap = 48 << 20             # conservative fallback (safe on v7x too)
    return int(max(32 << 20, min(need, cap)))


def dynamic_lora_apply(x, prep, *, block_m=512):
    """x: [B, S, in_features] -> [B, S, out_features]."""
    B, S, in_features = x.shape
    assert in_features == prep["in_features"]
    out_features = prep["out_features"]
    r = prep["r_max"]
    tn, tk, Np, Kp = prep["tn"], prep["tk"], prep["Np"], prep["Kp"]

    M = B * S
    tm = min(_round_up(block_m, 8), _round_up(M, 8))
    Mp = _round_up(M, tm)
    nk = Kp // tk
    grid = (Np // tn, Mp // tm, nk)

    # Zero-padding is exact: padded K columns of x are zero, padded M rows and
    # padded N columns are sliced off below.
    x2d = _pad2d(x.reshape(M, in_features), Mp, Kp).astype(jnp.bfloat16)

    out_padded = pl.pallas_call(
        _dyn_lora_kernel,
        out_shape=jax.ShapeDtypeStruct((Mp, Np), jnp.float32),
        grid_spec=pltpu.PrefetchScalarGridSpec(
            num_scalar_prefetch=0,
            grid=grid,
            in_specs=[
                pl.BlockSpec((tm, tk), lambda j, i, k: (i, k)),    # x
                pl.BlockSpec((tk, tn), lambda j, i, k: (k, j)),    # W^T
                pl.BlockSpec((tk, r), lambda j, i, k: (k, 0)),     # ssh(A)^T
                pl.BlockSpec((r, tn), lambda j, i, k: (0, j)),     # s*ssh(B)^T
                pl.BlockSpec((1, tn), lambda j, i, k: (0, j)),     # bias
            ],
            out_specs=pl.BlockSpec((tm, tn), lambda j, i, k: (i, j)),
            scratch_shapes=[pltpu.VMEM((nk, tk, tn), jnp.bfloat16)],
        ),
        compiler_params=pltpu.CompilerParams(
            # M must stay "arbitrary": the w_eff cache carries state across it.
            dimension_semantics=("parallel", "arbitrary", "arbitrary"),
            vmem_limit_bytes=_vmem_limit_bytes(tm, tn, tk, r, nk),
        ),
    )(x2d, prep["wt"], prep["sa_t"], prep["sb_t"], prep["bias"])

    out = out_padded[:M, :out_features].reshape(B, S, out_features)
    return out.astype(x.dtype)


def dynamic_lora_forward(x, w, b, lora_a, lora_b, threshold, *, r_max,
                         block_m=512, block_n=512, block_k=512):
    prep = prepare_dynamic_lora(w, b, lora_a, lora_b, threshold, r_max=r_max,
                                block_n=block_n, block_k=block_k)
    return dynamic_lora_apply(x, prep, block_m=block_m)


def _reference(x, w, b, lora_a, lora_b, threshold, r_max):
    hi = jax.lax.Precision.HIGHEST
    sa = _softshrink(lora_a, threshold)
    sb = _softshrink(lora_b, threshold)
    base = jnp.einsum("bsi,oi->bso", x, w, precision=hi) + b
    inter = jnp.einsum("bsi,ri->brs", x, sa, precision=hi)
    lora = jnp.einsum("brs,or->bos", inter, sb, precision=hi)
    lora = jnp.transpose(lora, (0, 2, 1))
    return base + lora * (1.0 / r_max)


if __name__ == "__main__":
    # Small shapes consistent with the module's forward (x is [batch, seq, in]).
    # M=256 with block_m=128 exercises the cached-w_eff reuse path (i > 0),
    # OUT=256 -> two N tiles (parallel axis), block_k=128 -> two K steps.
    Bsz, Seq, IN, OUT, R_MAX = 2, 128, 256, 256, 8

    key = jax.random.PRNGKey(0)
    kx, kw, kb, ka, kbl = jax.random.split(key, 5)

    x = jax.random.normal(kx, (Bsz, Seq, IN), dtype=jnp.float32)

    # Deterministic parameter init (shapes follow the module's __init__).
    bound = (1.0 / IN) ** 0.5
    w = jax.random.uniform(kw, (OUT, IN), minval=-bound, maxval=bound,
                           dtype=jnp.float32)
    b = jax.random.uniform(kb, (OUT,), minval=-bound, maxval=bound,
                           dtype=jnp.float32)
    lora_a = jax.random.uniform(ka, (R_MAX, IN), minval=-bound, maxval=bound,
                                dtype=jnp.float32)
    # NOTE: the module zero-inits lora_B (LoRA path identically 0); use random
    # values here so the LoRA path is actually exercised by the check.
    lora_b = 0.5 * jax.random.normal(kbl, (OUT, R_MAX), dtype=jnp.float32)
    threshold = jnp.asarray(0.003, dtype=jnp.float32)

    # Prepare once (weight-update time), apply per forward call.
    prep = prepare_dynamic_lora(w, b, lora_a, lora_b, threshold, r_max=R_MAX,
                                block_n=512, block_k=128)
    out = dynamic_lora_apply(x, prep, block_m=128)
    out = jax.block_until_ready(out)

    ref = _reference(x, w, b, lora_a, lora_b, threshold, R_MAX)
    assert out.shape == (Bsz, Seq, OUT)
    # x / W^T stream through the MXU as bf16 (f32 accumulation), so compare
    # against the f32 reference with a bf16-level tolerance.
    assert jnp.allclose(out, ref, atol=2e-2, rtol=2e-2), "mismatch vs reference"

    print("KERNEL_OK")
</pallas_src>

<mosaic_0001>
module attributes {stable_mosaic.version = 11 : i64} {
  func.func @_dyn_lora_kernel(%arg0: i32, %arg1: i32, %arg2: i32, %arg3: memref<128x128xbf16, #tpu.memory_space<vmem>>, %arg4: memref<128x128xbf16, #tpu.memory_space<vmem>>, %arg5: memref<128x8xf32, #tpu.memory_space<vmem>>, %arg6: memref<8x128xf32, #tpu.memory_space<vmem>>, %arg7: memref<1x128xf32, #tpu.memory_space<vmem>>, %arg8: memref<128x128xf32, #tpu.memory_space<vmem>>, %arg9: memref<2x128x128xbf16, #tpu.memory_space<vmem>>) attributes {dimension_semantics = [#tpu.dimension_semantics<parallel>, #tpu.dimension_semantics<arbitrary>, #tpu.dimension_semantics<arbitrary>], iteration_bounds = array<i64: 2, 2, 2>, scalar_prefetch = 0 : i64, scratch_operands = 1 : i64, tpu.core_type = #tpu.core_type<tc>, window_params = [{transform_indices = @transform_0, window_bounds = array<i64: 128, 128>}, {transform_indices = @transform_1, window_bounds = array<i64: 128, 128>}, {transform_indices = @transform_2, window_bounds = array<i64: 128, 8>}, {transform_indices = @transform_3, window_bounds = array<i64: 8, 128>}, {transform_indices = @transform_4, window_bounds = array<i64: 1, 128>}, {transform_indices = @transform_5, window_bounds = array<i64: 128, 128>}]} {
    %c0_i32 = arith.constant 0 : i32
    %0 = arith.cmpi eq, %arg1, %c0_i32 : i32
    %1 = arith.extui %0 : i1 to i32
    %c0_i32_0 = arith.constant 0 : i32
    %2 = arith.cmpi ne, %1, %c0_i32_0 : i32
    scf.if %2 {
      %c0_10 = arith.constant 0 : index
      %c0_11 = arith.constant 0 : index
      %14 = vector.load %arg5[%c0_10, %c0_11] : memref<128x8xf32, #tpu.memory_space<vmem>>, vector<128x8xf32>
      %c0_12 = arith.constant 0 : index
      %c0_13 = arith.constant 0 : index
      %15 = vector.load %arg6[%c0_12, %c0_13] : memref<8x128xf32, #tpu.memory_space<vmem>>, vector<8x128xf32>
      %cst_14 = arith.constant dense<0.000000e+00> : vector<128x128xf32>
      %16 = tpu.matmul %14, %15, %cst_14 {dimension_numbers = #tpu.dot_dimension_numbers<[1], [0], [0], [1], [0, 0, 1, 1], [], []>} : vector<128x8xf32>, vector<8x128xf32>, vector<128x128xf32> -> vector<128x128xf32>
      %c0_15 = arith.constant 0 : index
      %c0_16 = arith.constant 0 : index
      %17 = vector.load %arg4[%c0_15, %c0_16] : memref<128x128xbf16, #tpu.memory_space<vmem>>, vector<128x128xbf16>
      %18 = arith.extf %17 : vector<128x128xbf16> to vector<128x128xf32>
      %19 = arith.addf %18, %16 : vector<128x128xf32>
      %20 = arith.truncf %19 : vector<128x128xf32> to vector<128x128xbf16>
      %21 = arith.index_cast %arg2 : i32 to index
      %c0_17 = arith.constant 0 : index
      %c0_18 = arith.constant 0 : index
      %22 = vector.load %arg9[%21, %c0_17, %c0_18] : memref<2x128x128xbf16, #tpu.memory_space<vmem>>, vector<1x128x128xbf16>
      %23 = vector.shape_cast %22 : vector<1x128x128xbf16> to vector<128x128xbf16>
      %24 = vector.shape_cast %20 : vector<128x128xbf16> to vector<1x128x128xbf16>
      tpu.vector_store %arg9[%21, %c0_17, %c0_18], %24 {strides = array<i32>} : memref<2x128x128xbf16, #tpu.memory_space<vmem>>, vector<1x128x128xbf16>,
    } else {
    }
    %c0_i32_1 = arith.constant 0 : i32
    %3 = arith.cmpi eq, %arg2, %c0_i32_1 : i32
    %4 = arith.extui %3 : i1 to i32
    %c0_i32_2 = arith.constant 0 : i32
    %5 = arith.cmpi ne, %4, %c0_i32_2 : i32
    scf.if %5 {
      %c0_10 = arith.constant 0 : index
      %c0_11 = arith.constant 0 : index
      %14 = vector.load %arg7[%c0_10, %c0_11] : memref<1x128xf32, #tpu.memory_space<vmem>>, vector<1x128xf32>
      %15 = vector.shape_cast %14 : vector<1x128xf32> to vector<1x128xf32>
      %16 = vector.broadcast %15 : vector<1x128xf32> to vector<128x128xf32>
      %c0_12 = arith.constant 0 : index
      %c0_13 = arith.constant 0 : index
      %17 = vector.load %arg8[%c0_12, %c0_13] : memref<128x128xf32, #tpu.memory_space<vmem>>, vector<128x128xf32>
      tpu.vector_store %arg8[%c0_12, %c0_13], %16 {strides = array<i32>} : memref<128x128xf32, #tpu.memory_space<vmem>>, vector<128x128xf32>,
    } else {
    }
    %c0 = arith.constant 0 : index
    %c0_3 = arith.constant 0 : index
    %6 = vector.load %arg8[%c0, %c0_3] : memref<128x128xf32, #tpu.memory_space<vmem>>, vector<128x128xf32>
    %c0_4 = arith.constant 0 : index
    %c0_5 = arith.constant 0 : index
    %7 = vector.load %arg3[%c0_4, %c0_5] : memref<128x128xbf16, #tpu.memory_space<vmem>>, vector<128x128xbf16>
    %8 = arith.index_cast %arg2 : i32 to index
    %c0_6 = arith.constant 0 : index
    %c0_7 = arith.constant 0 : index
    %9 = vector.load %arg9[%8, %c0_6, %c0_7] : memref<2x128x128xbf16, #tpu.memory_space<vmem>>, vector<1x128x128xbf16>
    %10 = vector.shape_cast %9 : vector<1x128x128xbf16> to vector<128x128xbf16>
    %cst = arith.constant dense<0.000000e+00> : vector<128x128xf32>
    %11 = tpu.matmul %7, %10, %cst {dimension_numbers = #tpu.dot_dimension_numbers<[1], [0], [0], [1], [0, 0, 1, 1], [], []>} : vector<128x128xbf16>, vector<128x128xbf16>, vector<128x128xf32> -> vector<128x128xf32>
    %12 = arith.addf %6, %11 : vector<128x128xf32>
    %c0_8 = arith.constant 0 : index
    %c0_9 = arith.constant 0 : index
    %13 = vector.load %arg8[%c0_8, %c0_9] : memref<128x128xf32, #tpu.memory_space<vmem>>, vector<128x128xf32>
    tpu.vector_store %arg8[%c0_8, %c0_9], %12 {strides = array<i32>} : memref<128x128xf32, #tpu.memory_space<vmem>>, vector<128x128xf32>,
    return
  }
  func.func @transform_0(%arg0: i32, %arg1: i32, %arg2: i32) -> (i32, i32) {
    %c0_i32 = arith.constant 0 : i32
    return %arg1, %arg2 : i32, i32
  }
  func.func @transform_1(%arg0: i32, %arg1: i32, %arg2: i32) -> (i32, i32) {
    %c0_i32 = arith.constant 0 : i32
    return %arg2, %arg0 : i32, i32
  }
  func.func @transform_2(%arg0: i32, %arg1: i32, %arg2: i32) -> (i32, i32) {
    %c0_i32 = arith.constant 0 : i32
    %c0_i32_0 = arith.constant 0 : i32
    return %arg2, %c0_i32 : i32, i32
  }
  func.func @transform_3(%arg0: i32, %arg1: i32, %arg2: i32) -> (i32, i32) {
    %c0_i32 = arith.constant 0 : i32
    %c0_i32_0 = arith.constant 0 : i32
    return %c0_i32, %arg0 : i32, i32
  }
  func.func @transform_4(%arg0: i32, %arg1: i32, %arg2: i32) -> (i32, i32) {
    %c0_i32 = arith.constant 0 : i32
    %c0_i32_0 = arith.constant 0 : i32
    return %c0_i32, %arg0 : i32, i32
  }
  func.func @transform_5(%arg0: i32, %arg1: i32, %arg2: i32) -> (i32, i32) {
    %c0_i32 = arith.constant 0 : i32
    return %arg1, %arg0 : i32, i32
  }
}

</mosaic_0001>

<bundles_post_ra>
// kernel: tpu_custom_call.1
= control target key start
LH: loop header
LB: loop body
LE: loop exit
PB: predicated region body
PF: predicated region fallthrough
CT: control target
= control target key end

     0   :  { %s2176_s0 = inlined_call_operand.vmem [shape: bf16[256,256], index: 0, kind: input, shape index: {}]   ;;  %s2177_s1 = inlined_call_operand.hbm [shape: bf16[256,256], index: 1, kind: input, shape index: {}]   ;;  %s2178_s2 = inlined_call_operand.vmem [shape: f32[256,8], index: 2, kind: input, shape index: {}]   ;;  %s2179_s3 = inlined_call_operand.vmem [shape: f32[8,256], index: 3, kind: input, shape index: {}]   ;;  %s2180_s4 = inlined_call_operand.vmem [shape: f32[1,256], index: 4, kind: input, shape index: {}]   ;;  %s2181_s5 = inlined_call_operand.hbm [shape: f32[256,256], index: 5, kind: output, shape index: {}]  }
   0x1   :  { %2193 = sst [smem:[#allocation21_spill]] %s2176_s0 }
   0x2   :  { %2194 = sst [smem:[#allocation22_spill]] %s2177_s1 }
   0x3   :  { %2195 = sst [smem:[#allocation23_spill]] %s2178_s2 }
   0x4   :  { %2196 = sst [smem:[#allocation24_spill]] %s2179_s3 }
   0x5   :  { %2197 = sst [smem:[#allocation25_spill]] %s2180_s4 }
   0x6   :  { %2198 = sst [smem:[#allocation26_spill]] %s2181_s5 }
   0x7   :  { %10 = vsyncpa [#allocation5], 0 }
   0x8   :  { %12 = vsyncpa [#allocation5 + $0x1], 0 }
   0x9   :  { %13 = vsyncpa [#allocation6], 0 }
   0xa   :  { %15 = vsyncpa [#allocation6 + $0x1], 0  ;;  %s1721_s18 = smov 0   ;;  %s1723_s19 = smov 0  }
   0xb   :  { %s1725_s20 = smov 0   ;;  %s1727_s21 = smov 0  }
   0xc   :  { %s1729_s22 = smov 0   ;;  %s1731_s23 = smov 0  }
   0xd   :  { %s1733_s24 = smov 0   ;;  %s1735_s25 = smov 0  }
   0xe   :  { %s1737_s26 = smov 0   ;;  %s1739_s27 = smov 0  }
   0xf   :  { %s1741_s28 = smov 0   ;;  %s1743_s29 = smov 0  }
  0x10   :  { %s1745_s30 = smov 0   ;;  %s1747_s6 = smov 0  }
  0x11   :  { %s1749_s7 = smov 0  }
  0x12 LB: > { %2199 = sst [smem:[#allocation10_spill]] %s1653_s25  ;;  %s33_s10 = sadd.s32 1, %s1669_s29  ;;  %s1681_s7 = sphi %s1749_s7, %s21_s7   ;;  %s1677_s6 = sphi %s1747_s6, %s2241_s6   ;;  %s1673_s30 = sphi %s1745_s30, %s2240_s30   ;;  %s1669_s29 = sphi %s1743_s29, %s2239_s29   ;;  %s1665_s28 = sphi %s1741_s28, %s2238_s28   ;;  %s1661_s27 = sphi %s1739_s27, %s2237_s27   ;;  %s1657_s26 = sphi %s1737_s26, %s2236_s26   ;;  %s1653_s25 = sphi %s1735_s25, %s2235_s25   ;;  %s1649_s24 = sphi %s1733_s24, %s2234_s24   ;;  %s1645_s23 = sphi %s1731_s23, %s2247_s23   ;;  %s1641_s22 = sphi %s1729_s22, %s2246_s22   ;;  %s1637_s21 = sphi %s1727_s21, %s2245_s21   ;;  %s1633_s20 = sphi %s1725_s20, %s2244_s20   ;;  %s1629_s19 = sphi %s1723_s19, %s2243_s19   ;;  %s1625_s18 = sphi %s1721_s18, %s2242_s18  }
  0x13   : > { %2200 = sst [smem:[#allocation11_spill]] %s1661_s27  ;;  %s36_s11 = sadd.s32 1, %s1673_s30 }
  0x14   : > { %2201 = sst [smem:[#allocation12_spill]] %s1665_s28  ;;  %p34_p0 = scmp.ge.s32.totalorder %s33_s10, 2 }
  0x15   : > { %2202 = sst [smem:[#allocation13_spill]] %s1669_s29  ;;  %s40_s12 = sadd.s32 1, %s1677_s6 }
  0x16   : > { %2203 = sst [smem:[#allocation14_spill]] %s1673_s30  ;;  %s49_s13 = sadd.s32 1, %s1653_s25 }
  0x17   : > { %2204 = sst [smem:[#allocation15_spill]] %s1677_s6  ;;  %p56_p1 = scmp.ne.s32.totalorder %s1653_s25, %s1649_s24 }
  0x18   : > { %s2249_s10 = smov (%p34_p0, %s33_s10), 0  ;;  %s2251_s11 = smov (!%p34_p0, %s36_s11), %s1673_s30 }
  0x19   : > { %2205 = sst [smem:[#allocation16_spill]] %s2249_s10  ;;  %s45_s14 = ssub.s32 %s1669_s29, %s2249_s10 }
  0x1a   : > { %p57_p2 = scmp.eq.s32.totalorder %s1681_s7, 0  ;;  %p38_p3 = scmp.ge.s32.totalorder %s2251_s11, 2 }
  0x1b   : > { %s77_s15 = sadd.s32 1, %s1645_s23  ;;  %p84_p5 = scmp.ne.s32.totalorder %s1645_s23, %s1641_s22 }
  0x1c   : > { %p1811_p4 = por %p57_p2, %p56_p1  ;;  %s2253_s11 = smov (%p38_p3, %s2251_s11), 0 }
  0x1d   : > { %2207 = sst [smem:[#allocation17_spill]] %s2253_s11  ;;  %s2255_s12 = smov (!%p38_p3, %s40_s12), %s1677_s6 }
  0x1e   : > { %s44_s17 = ssub.s32 %s1673_s30, %s2253_s11  ;;  %p1822_p6 = por %p84_p5, %p57_p2 }
  0x1f   : > { %p42_p7 = scmp.ge.s32.totalorder %s2255_s12, 2  ;;  %s46_s8 = sor.u32 %s45_s14, %s44_s17 }
  0x20   : > { %p47_p8 = scmp.eq.s32.totalorder %s46_s8, 0  ;;  %p90_p9 = scmp.ne.s32.totalorder %s1641_s22, %s1637_s21 }
  0x21   : > { %s2257_s12 = smov (%p42_p7, %s2255_s12), 0  ;;  %s2211_s5 = sadd.s32 4294967295, %s1681_s7  }
  0x22   : > { %2209 = sst [smem:[#allocation18_spill]] %s2257_s12  ;;  %s73_s10 = ssub.s32 %s1677_s6, %s2257_s12 }
  0x23   : > { %s1831_s11 = scalar_select %p47_p8, %s1653_s25, %s49_s13  }
  0x24   : > { %p91_p10 = scmp.eq.s32.totalorder %s2211_s5, 0  ;;  %s74_s27 = sor.u32 %s73_s10, %s45_s14 }
  0x25   : > { %2210 = sst [smem:[#allocation19_spill]] %s1831_s11  ;;  %s180_s4 = sor.u32 %s73_s10, %s44_s17 }
  0x26   : > { %p75_p11 = scmp.eq.s32.totalorder %s74_s27, 0  ;;  %p1837_p12 = por %p91_p10, %p90_p9 }
  0x27   : > { %p181_p13 = scmp.eq.s32.totalorder %s180_s4, 0  ;;  %s183_s8 = sadd.s32 1, %s1633_s20 }
  0x28   : > { %s1843_s2 = scalar_select %p75_p11, %s1645_s23, %s77_s15  }
  0x29   : > { %s1846_s21 = scalar_select %p181_p13, %s1633_s20, %s183_s8  }
  0x2a   : > { %2213 = sst [smem:[#allocation20_spill]] %s1843_s2  ;;  %p193_p0 = scmp.ne.s32.totalorder %s1633_s20, %s1629_s19 }
  0x2b   : > { %s2214_s28 = smov %s2211_s5  ;;  %p199_p2 = scmp.ne.s32.totalorder %s1629_s19, %s1625_s18 }
  0x2c   : > { %p194_p1 = scmp.eq.s32.totalorder %s2214_s28, 7  ;;  %s2215_s13 = sadd.s32 4294967294, %s1681_s7  }
  0x2d   : > { %p200_p3 = scmp.eq.s32.totalorder %s2215_s13, 7  ;;  %p1150_p8 = scmp.ge.s32.totalorder %s1681_s7, 8 }
  0x2e   : > { %p1856_p5 = por %p194_p1, %p193_p0 }
  0x2f   : > { %p1860_p7 = por %p200_p3, %p199_p2  ;;  %216 = sbr.rel (%p1150_p8) target bundleno = 107 (0x6b), region = 16 }
  0x30   : > { %s2216_s5 = scalar_select %p1856_p5, 1, 0 }
  0x31   : > { %s2217_s27 = scalar_select %p1860_p7, 1, 0 }
  0x36   : > { %219 = sbr.rel (!%p1811_p4) target bundleno = 74 (0x4a), region = 20  ;;  %s221_s4 = sand.u32 (%p1811_p4), 1, %s1653_s25  }
  0x37   : > { %s1203_s28 = sshll.u32 (%p1811_p4), %s1673_s30, 5  ;;  %s1151_s10 = sshll.u32 (%p1811_p4), %s221_s4, 6 }
  0x38   : > { %s226_s14 = sadd.s32 (%p1811_p4), %s1669_s29, %s1203_s28  ;;  %s2218_s0 = sld [smem:[#allocation21_spill]] (%p1811_p4) }
  0x39   : > { %s1154_s15 = sshll.u32 (%p1811_p4), %s226_s14, 2  ;;  %s223_s16 = scalar_lea.vmem (%p1811_p4), [#allocation3], %s1151_s10 }
  0x3e   : > { %s1873_s13 = scalar_lea.vmem %s2218_s0, %s1154_s15 }
  0x3f   : > { %v244_v0 = vld [vmem:[%s1873_s13] sm:$0xf]  ;;  %v246_v1 = vld [vmem:[%s1873_s13 + $0x8] sm:$0xf]  ;;  %v248_v2 = vld [vmem:[%s1873_s13 + $0x10] sm:$0xf] }
  0x40   : > { %245 = vst [vmem:[%s223_s16] sm:$0xf] %v244_v0  ;;  %247 = vst [vmem:[%s223_s16 + $0x4] sm:$0xf] %v246_v1  ;;  %v250_v3 = vld [vmem:[%s1873_s13 + $0x18] sm:$0xf] }
  0x41   : > { %249 = vst [vmem:[%s223_s16 + $0x8] sm:$0xf] %v248_v2  ;;  %v252_v4 = vld [vmem:[%s1873_s13 + $0x20] sm:$0xf]  ;;  %v254_v5 = vld [vmem:[%s1873_s13 + $0x28] sm:$0xf] }
  0x42   : > { %251 = vst [vmem:[%s223_s16 + $0xc] sm:$0xf] %v250_v3  ;;  %253 = vst [vmem:[%s223_s16 + $0x10] sm:$0xf] %v252_v4  ;;  %v256_v6 = vld [vmem:[%s1873_s13 + $0x30] sm:$0xf] }
  0x43   : > { %255 = vst [vmem:[%s223_s16 + $0x14] sm:$0xf] %v254_v5  ;;  %v258_v7 = vld [vmem:[%s1873_s13 + $0x38] sm:$0xf]  ;;  %v260_v8 = vld [vmem:[%s1873_s13 + $0x40] sm:$0xf] }
  0x44   : > { %257 = vst [vmem:[%s223_s16 + $0x18] sm:$0xf] %v256_v6  ;;  %259 = vst [vmem:[%s223_s16 + $0x1c] sm:$0xf] %v258_v7  ;;  %v262_v9 = vld [vmem:[%s1873_s13 + $0x48] sm:$0xf] }
  0x45   : > { %261 = vst [vmem:[%s223_s16 + $0x20] sm:$0xf] %v260_v8  ;;  %v264_v10 = vld [vmem:[%s1873_s13 + $0x50] sm:$0xf]  ;;  %v266_v11 = vld [vmem:[%s1873_s13 + $0x58] sm:$0xf] }
  0x46   : > { %263 = vst [vmem:[%s223_s16 + $0x24] sm:$0xf] %v262_v9  ;;  %265 = vst [vmem:[%s223_s16 + $0x28] sm:$0xf] %v264_v10  ;;  %v268_v12 = vld [vmem:[%s1873_s13 + $0x60] sm:$0xf] }
  0x47   : > { %267 = vst [vmem:[%s223_s16 + $0x2c] sm:$0xf] %v266_v11  ;;  %v270_v13 = vld [vmem:[%s1873_s13 + $0x68] sm:$0xf]  ;;  %v272_v14 = vld [vmem:[%s1873_s13 + $0x70] sm:$0xf] }
  0x48   : > { %269 = vst [vmem:[%s223_s16 + $0x30] sm:$0xf] %v268_v12  ;;  %271 = vst [vmem:[%s223_s16 + $0x34] sm:$0xf] %v270_v13  ;;  %v274_v15 = vld [vmem:[%s1873_s13 + $0x78] sm:$0xf] }
  0x49   : > { %273 = vst [vmem:[%s223_s16 + $0x38] sm:$0xf] %v272_v14  ;;  %275 = vst [vmem:[%s223_s16 + $0x3c] sm:$0xf] %v274_v15 }
  0x4a PF: > { %s331_s4 = sand.u32 1, %s1645_s23   ;;  %s1204_s28 = sshll.u32 %s1669_s29, 5 }
  0x4b   : > { %s1155_s10 = sshll.u32 %s331_s4, 6  ;;  %s341_s14 = sadd.s32 %s1677_s6, %s1204_s28 }
  0x4c   : > { %s1158_s15 = sshll.u32 %s341_s14, 6  ;;  %s335_s17 = scalar_lea.vmem [#allocation4], %s1155_s10 }
  0x4d   : > { %s344_s8 = sshll.u32 %s335_s17, 4  ;;  %s2219_s1 = sld [smem:[#allocation22_spill]]  ;;  %s1899_s8 = int_to_ptr.vmem [resolvable:$true] %s344_s8 }
  0x4e   : > { %s1901_s13 = scalar_lea.sflag [#allocation5], %s331_s4 }
  0x53   : > { %s1897_s30 = scalar_lea.hbm %s2219_s1, %s1158_s15  ;;  %s1503_s14 = scalar_lea.hbm %s2219_s1, 4096 }
  0x54   : > { %s1499_s16 = scalar_lea.hbm %s1897_s30, 1024  ;;  %p1504_p11 = scmp.lt.u32.totalorder %s1897_s30, %s2219_s1 }
  0x55   : > { %p1500_p4 = scmp.ne.s32.totalorder %s1897_s30, %s1499_s16  ;;  %p1505_p13 = scmp.lt.u32.totalorder %s1503_s14, %s1499_s16 }
  0x56   : > { %p1507_p1 = scmp.lt.u32.totalorder %s1499_s16, %s1897_s30 }
  0x57   : > { %p1501_p9 = pnand %p1500_p4, %p1822_p6  ;;  %p1506_p0 = por %p1505_p13, %p1504_p11 }
  0x59   : > { %p1502_p10 = pneg %p1501_p9  ;;  %p1508_p2 = por %p1507_p1, %p1506_p0 }
  0x5b   : > { %p1509_p3 = pnand %p1508_p2, %p1502_p10 }
  0x5d   : > { %1512 = shalt.err (!%p1509_p3)
}
  0x5e   : > { %s1513_s4 = scalar_lea.vmem %s1899_s8, 1024  ;;  %s1683_s15 = smov [#allocation4]  }
  0x5f   : > { %p1514_p8 = scmp.ne.s32.totalorder %s1899_s8, %s1513_s4  ;;  %s1517_s17 = sshll.u32 %s1683_s15, 4  ;;  %s1518_s17 = int_to_ptr.vmem [resolvable:$false] %s1517_s17 }
  0x60   : > { %s1519_s28 = scalar_lea.vmem %s1518_s17, 2048  ;;  %p1520_p7 = scmp.lt.s32.totalorder %s1899_s8, %s1518_s17 }
  0x61   : > { %p1515_p4 = pnand %p1514_p8, %p1822_p6  ;;  %p1521_p5 = scmp.lt.s32.totalorder %s1519_s28, %s1513_s4 }
  0x63   : > { %p1516_p9 = pneg %p1515_p4  ;;  %p1522_p11 = por %p1521_p5, %p1520_p7 }
  0x65   : > { %p1523_p13 = pnand %p1522_p11, %p1516_p9 }
  0x67   : > { %1526 = shalt.err (!%p1523_p13)
}
  0x68   : > { %s1684_s16 = smov 128   ;;  %s1685_s10 = smov 64  }
  0x69   : > { %s1686_s14 = smov 4  }
  0x6a   : > { %1356 = dma.hbm_to_vmem [thread:$0]  (%p1822_p6), %s1897_s30, 1024, %s1899_s8, %s1901_s13, %s1684_s16, %s1685_s10, %s1686_s14  }
  0x6b PF: > { %p1159_p10 = scmp.ge.s32.totalorder %s1681_s7, 1  ;;  %p374_p0 = scmp.lt.s32.totalorder %s1681_s7, 9 }
  0x6d   : > { %p375_p1 = pnand %p1159_p10, %p374_p0 }
  0x6e   : > { %s381_s0 = sand.u32 (!%p375_p1), 1, %s1649_s24   ;;  %s387_s12 = sand.u32 (!%p375_p1), 1, %s1641_s22  }
  0x6f   : > { %378 = sbr.rel (%p375_p1) target bundleno = 651 (0x28b), region = 77  ;;  %s1160_s4 = sshll.u32 (!%p375_p1), %s381_s0, 6 }
  0x70   : > { %s1161_s15 = sshll.u32 (!%p375_p1), %s387_s12, 6  ;;  %s1929_s17 = scalar_lea.vmem (!%p375_p1), [#allocation3], %s1160_s4 }
  0x71   : > { %s388_s28 = scalar_lea.sflag (!%p375_p1), [#allocation5], %s387_s12  ;;  %s1931_s1 = scalar_lea.vmem (!%p375_p1), [#allocation4], %s1161_s15 }
  0x76   : > { %1616 = dma.done.wait (%p1837_p12), %s388_s28, 1024  }
  0x77   : > { %1618 = vsyncadd (%p1837_p12), %s388_s28, 4294966272  ;;  %s2220_s30 = sld [smem:[#allocation12_spill]]  ;;  %s2190_s9 = sand.u32 1, %s1629_s19  }
  0x78   : > { %s1163_s24 = sshll.u32 %s1657_s26, 4  ;;  %s1162_s8 = sshll.u32 %s2190_s9, 7 }
  0x79   : > { %p437_p6 = scmp.lt.s32.totalorder %s1163_s24, 31  ;;  %s2221_s10 = sld [smem:[#allocation23_spill]] }
  0x7a   : > { %s2222_s15 = sld [smem:[#allocation24_spill]]  ;;  %s2223_s29 = sld [smem:[#allocation25_spill]] }
  0x7b   : > { %s2259_s24 = smov (!%p437_p6, %s1163_s24), 31  ;;  %s1958_s25 = scalar_lea.vmem [#allocation7], %s1162_s8 }
  0x7c   : > { %s1164_s13 = sshll.u32 %s2259_s24, 3  ;;  %s2224_s2 = sld [smem:[#allocation11_spill]] }
  0x7d   : > { %p442_p5 = scmp.lt.s32.totalorder %s2220_s30, 1 }
  0x7f   : > { %s2261_s30 = smov (!%p442_p5, %s2220_s30), 1  ;;  %s1948_s14 = scalar_lea.vmem %s2221_s10, %s1164_s13 }
  0x80   : > { %s1165_s0 = sshll.u32 %s2261_s30, 3  ;;  %s448_s11 = scalar_lea.vmem %s2223_s29, %s2261_s30 }
  0x81   : > { %s445_s28 = scalar_lea.vmem %s2222_s15, %s1165_s0 }
  0x82   : > { %p1166_p12 = scmp.ne.s32.totalorder %s2224_s2, 0 }
  0x83   : > { %v471_v16 = vld [vmem:[%s445_s28] sm:$0xff] (!%p1166_p12)  ;;  %vm472_vm0 = vcmask (!%p1166_p12), 64512   ;;  %v456_v19 = vld [vmem:[%s1948_s14 + $0x8] sm:$0xff] (!%p1166_p12)  ;;  %v457_v21 = vld [vmem:[%s1948_s14 + $0x10] sm:$0xff] (!%p1166_p12)  ;;  %s1205_s2 = sshll.u32 (!%p1166_p12), %s1657_s26, 6 }
  0x84   : > { %454 = sbr.rel (%p1166_p12) target bundleno = 365 (0x16d), region = 89  ;;  %v455_v17 = vld [vmem:[%s1948_s14] sm:$0xff] (!%p1166_p12)  ;;  %1280 = vmatprep.subr.mxu0 (!%p1166_p12), %v471_v16  ;;  %1338 = vmatprep.subr.mxu1 (!%p1166_p12), %v471_v16  ;;  %v464_v20 = vld [vmem:[%s1948_s14 + $0x48] sm:$0xff] (!%p1166_p12)  ;;  %v465_v22 = vld [vmem:[%s1948_s14 + $0x50] sm:$0xff] (!%p1166_p12)  ;;  %s2000_s29 = scalar_lea.vmem (!%p1166_p12), [#allocation2], %s1205_s2 }
  0x85   : > { %v463_v18 = vld [vmem:[%s1948_s14 + $0x40] sm:$0xff] (!%p1166_p12)  ;;  %1281 = vmatpush3.msra.mxu0 (!%p1166_p12), %v471_v16  ;;  %1339 = vmatpush3.msra.mxu1 (!%p1166_p12), %v471_v16  ;;  %v458_v23 = vld [vmem:[%s1948_s14 + $0x18] sm:$0xff] (!%p1166_p12)  ;;  %v460_v27 = vld [vmem:[%s1948_s14 + $0x28] sm:$0xff] (!%p1166_p12) }
  0x86   : > { %1282 = vmatprep.mubr.msk.f32.mxu0 (!%p1166_p12), %vm472_vm0, %v455_v17  ;;  %1294 = vmatprep.mubr.msk.f32.mxu1 (!%p1166_p12), %vm472_vm0, %v463_v18  ;;  %v466_v24 = vld [vmem:[%s1948_s14 + $0x58] sm:$0xff] (!%p1166_p12)  ;;  %v459_v25 = vld [vmem:[%s1948_s14 + $0x20] sm:$0xff] (!%p1166_p12)  ;;  %v468_v28 = vld [vmem:[%s1948_s14 + $0x68] sm:$0xff] (!%p1166_p12) }
  0x87   : > { %1283 = vmatmul.mubr.msk.f32.vlgmr.msra.gmra.mrb[0].mxu0 (!%p1166_p12), %vm472_vm0, %v456_v19  ;;  %1295 = vmatmul.mubr.msk.f32.vlgmr.msra.gmra.mrb[0].mxu1 (!%p1166_p12), %vm472_vm0, %v464_v20  ;;  %v467_v26 = vld [vmem:[%s1948_s14 + $0x60] sm:$0xff] (!%p1166_p12)  ;;  %v461_v29 = vld [vmem:[%s1948_s14 + $0x30] sm:$0xff] (!%p1166_p12)  ;;  %v462_v31 = vld [vmem:[%s1948_s14 + $0x38] sm:$0xff] (!%p1166_p12) }
  0x88   : > { %1285 = vmatprep.mubr.msk.f32.mxu0 (!%p1166_p12), %vm472_vm0, %v457_v21  ;;  %1297 = vmatprep.mubr.msk.f32.mxu1 (!%p1166_p12), %vm472_vm0, %v465_v22  ;;  %v469_v30 = vld [vmem:[%s1948_s14 + $0x70] sm:$0xff] (!%p1166_p12)  ;;  %v470_v32 = vld [vmem:[%s1948_s14 + $0x78] sm:$0xff] (!%p1166_p12)  ;;  %v1209_v33 = vld [vmem:[%s1931_s1] sm:$0xff] (!%p1166_p12)  }
  0x89   : > { %v1243_v34 = vld [vmem:[%s1931_s1 + $0x20] sm:$0xff] (!%p1166_p12)   ;;  %v1211_v35 = vunpack.c.h.bf16 (!%p1166_p12), %v1209_v33  ;;  %v1210_v37 = vunpack.c.l.bf16 (!%p1166_p12), %v1209_v33  ;;  %v1240_v39 = vld [vmem:[%s1931_s1 + $0x8] sm:$0xff] (!%p1166_p12)   ;;  %v1241_v53 = vld [vmem:[%s1931_s1 + $0x10] sm:$0xff] (!%p1166_p12)  }
  0x8a   : > { %v1227_v36 = vunpack.c.h.bf16 (!%p1166_p12), %v1243_v34  ;;  %v1226_v38 = vunpack.c.l.bf16 (!%p1166_p12), %v1243_v34  ;;  %v1244_v40 = vld [vmem:[%s1931_s1 + $0x28] sm:$0xff] (!%p1166_p12)   ;;  %v1215_v47 = vunpack.c.h.bf16 (!%p1166_p12), %v1240_v39  ;;  %v1214_v51 = vunpack.c.l.bf16 (!%p1166_p12), %v1240_v39  ;;  %v1245_v54 = vld [vmem:[%s1931_s1 + $0x30] sm:$0xff] (!%p1166_p12)   ;;  %v1242_v5 = vld [vmem:[%s1931_s1 + $0x18] sm:$0xff] (!%p1166_p12)  }
  0x8b   : > { %1286 = vmatmul.mubr.msk.f32.gmra.mrb[2].mxu0 %vm472_vm0, %v458_v23  ;;  %1298 = vmatmul.mubr.msk.f32.gmra.mrb[2].mxu1 %vm472_vm0, %v466_v24  ;;  %v1231_v48 = vunpack.c.h.bf16 %v1244_v40  ;;  %v1230_v52 = vunpack.c.l.bf16 %v1244_v40  ;;  %v1219_v63 = vunpack.c.h.bf16 %v1241_v53  ;;  %v1235_v0 = vunpack.c.h.bf16 %v1245_v54  ;;  %v1246_v6 = vld [vmem:[%s1931_s1 + $0x38] sm:$0xff]  }
  0x8c   : > { %1288 = vmatprep.mubr.msk.f32.mxu0 %vm472_vm0, %v459_v25  ;;  %1300 = vmatprep.mubr.msk.f32.mxu1 %vm472_vm0, %v467_v26  ;;  %v1218_v3 = vunpack.c.l.bf16 %v1241_v53  ;;  %v1234_v4 = vunpack.c.l.bf16 %v1245_v54  ;;  %v1223_v15 = vunpack.c.h.bf16 %v1242_v5  ;;  %v1239_v16 = vunpack.c.h.bf16 %v1246_v6 }
  0x8d   : > { %v1222_v19 = vunpack.c.l.bf16 %v1242_v5  ;;  %v1238_v20 = vunpack.c.l.bf16 %v1246_v6 }
  0x8f   : > { %1289 = vmatmul.mubr.msk.f32.gmra.mrb[4].mxu0 %vm472_vm0, %v460_v27  ;;  %1301 = vmatmul.mubr.msk.f32.gmra.mrb[4].mxu1 %vm472_vm0, %v468_v28 }
  0x90   : > { %1291 = vmatprep.mubr.msk.f32.mxu0 %vm472_vm0, %v461_v29  ;;  %1303 = vmatprep.mubr.msk.f32.mxu1 %vm472_vm0, %v469_v30 }
  0x93   : > { %1292 = vmatmul.mubr.msk.f32.gmra.mrb[6].mxu0 %vm472_vm0, %v462_v31  ;;  %1304 = vmatmul.mubr.msk.f32.gmra.mrb[6].mxu1 %vm472_vm0, %v470_v32 }
 0x15a   : > { %v1284_v41 = vpop.f32.mrb[0].mxu0  ;;  %v1296_v42 = vpop.f32.mrb[0].mxu1 }
 0x15b   : > { %v699_v43 = vadd.f32 %v1284_v41, %v1211_v35  ;;  %v707_v44 = vadd.f32 %v1296_v42, %v1227_v36  ;;  %v587_v45 = vpop.f32.mrb[1].mxu0  ;;  %v627_v46 = vpop.f32.mrb[1].mxu1 }
 0x15c   : > { %v698_v49 = vadd.f32 %v1210_v37, %v587_v45  ;;  %v706_v50 = vadd.f32 %v1226_v38, %v627_v46 }
 0x15e   : > { %v714_v55 = vpack.c.bf16 %v699_v43, %v698_v49  ;;  %v718_v56 = vpack.c.bf16 %v707_v44, %v706_v50  ;;  %v1287_v57 = vpop.f32.mrb[2].mxu0  ;;  %v1299_v58 = vpop.f32.mrb[2].mxu1 }
 0x15f   : > { %v701_v59 = vadd.f32 %v1287_v57, %v1215_v47  ;;  %v709_v60 = vadd.f32 %v1299_v58, %v1231_v48  ;;  %v597_v61 = vpop.f32.mrb[3].mxu0  ;;  %v637_v62 = vpop.f32.mrb[3].mxu1 }
 0x160   : > { %725 = vst [vmem:[%s2000_s29] sm:$0xff] %v714_v55  ;;  %729 = vst [vmem:[%s2000_s29 + $0x20] sm:$0xff] %v718_v56  ;;  %v700_v1 = vadd.f32 %v1214_v51, %v597_v61  ;;  %v708_v2 = vadd.f32 %v1230_v52, %v637_v62 }
 0x162   : > { %v715_v7 = vpack.c.bf16 %v701_v59, %v700_v1  ;;  %v719_v8 = vpack.c.bf16 %v709_v60, %v708_v2  ;;  %v1290_v9 = vpop.f32.mrb[4].mxu0  ;;  %v1302_v10 = vpop.f32.mrb[4].mxu1 }
 0x163   : > { %v703_v11 = vadd.f32 %v1290_v9, %v1219_v63  ;;  %v711_v12 = vadd.f32 %v1302_v10, %v1235_v0  ;;  %v607_v13 = vpop.f32.mrb[5].mxu0  ;;  %v647_v14 = vpop.f32.mrb[5].mxu1 }
 0x164   : > { %726 = vst [vmem:[%s2000_s29 + $0x8] sm:$0xff] %v715_v7  ;;  %730 = vst [vmem:[%s2000_s29 + $0x28] sm:$0xff] %v719_v8  ;;  %v702_v17 = vadd.f32 %v1218_v3, %v607_v13  ;;  %v710_v18 = vadd.f32 %v1234_v4, %v647_v14 }
 0x166   : > { %v716_v21 = vpack.c.bf16 %v703_v11, %v702_v17  ;;  %v720_v22 = vpack.c.bf16 %v711_v12, %v710_v18  ;;  %v1293_v23 = vpop.f32.mrb[6].mxu0  ;;  %v1305_v24 = vpop.f32.mrb[6].mxu1 }
 0x167   : > { %v705_v25 = vadd.f32 %v1293_v23, %v1223_v15  ;;  %v713_v26 = vadd.f32 %v1305_v24, %v1239_v16  ;;  %v617_v27 = vpop.f32.mrb[7].mxu0  ;;  %v657_v28 = vpop.f32.mrb[7].mxu1 }
 0x168   : > { %727 = vst [vmem:[%s2000_s29 + $0x10] sm:$0xff] %v716_v21  ;;  %731 = vst [vmem:[%s2000_s29 + $0x30] sm:$0xff] %v720_v22  ;;  %v704_v29 = vadd.f32 %v1222_v19, %v617_v27  ;;  %v712_v30 = vadd.f32 %v1238_v20, %v657_v28 }
 0x16a   : > { %v717_v31 = vpack.c.bf16 %v705_v25, %v704_v29  ;;  %v721_v32 = vpack.c.bf16 %v713_v26, %v712_v30 }
 0x16c   : > { %728 = vst [vmem:[%s2000_s29 + $0x18] sm:$0xff] %v717_v31  ;;  %732 = vst [vmem:[%s2000_s29 + $0x38] sm:$0xff] %v721_v32 }
 0x16d PF: > { %p1185_p7 = scmp.ne.s32.totalorder %s1657_s26, 0 }
 0x16e   : > { %v1186_v33 = vld [vmem:[%s448_s11] ss:$0 sm:$0xff] (!%p1185_p7) }
 0x16f   : > { %736 = sbr.rel (%p1185_p7) target bundleno = 375 (0x177), region = 93  ;;  %744 = vst [vmem:[%s1958_s25] sm:$0xff] (!%p1185_p7), %v1186_v33  ;;  %745 = vst [vmem:[%s1958_s25 + $0x8] sm:$0xff] (!%p1185_p7), %v1186_v33 }
 0x170   : > { %746 = vst [vmem:[%s1958_s25 + $0x10] sm:$0xff] (!%p1185_p7), %v1186_v33  ;;  %747 = vst [vmem:[%s1958_s25 + $0x18] sm:$0xff] (!%p1185_p7), %v1186_v33 }
 0x171   : > { %748 = vst [vmem:[%s1958_s25 + $0x20] sm:$0xff] (!%p1185_p7), %v1186_v33  ;;  %749 = vst [vmem:[%s1958_s25 + $0x28] sm:$0xff] (!%p1185_p7), %v1186_v33 }
 0x172   : > { %750 = vst [vmem:[%s1958_s25 + $0x30] sm:$0xff] (!%p1185_p7), %v1186_v33  ;;  %751 = vst [vmem:[%s1958_s25 + $0x38] sm:$0xff] (!%p1185_p7), %v1186_v33 }
 0x173   : > { %752 = vst [vmem:[%s1958_s25 + $0x40] sm:$0xff] (!%p1185_p7), %v1186_v33  ;;  %753 = vst [vmem:[%s1958_s25 + $0x48] sm:$0xff] (!%p1185_p7), %v1186_v33 }
 0x174   : > { %754 = vst [vmem:[%s1958_s25 + $0x50] sm:$0xff] (!%p1185_p7), %v1186_v33  ;;  %755 = vst [vmem:[%s1958_s25 + $0x58] sm:$0xff] (!%p1185_p7), %v1186_v33 }
 0x175   : > { %756 = vst [vmem:[%s1958_s25 + $0x60] sm:$0xff] (!%p1185_p7), %v1186_v33  ;;  %757 = vst [vmem:[%s1958_s25 + $0x68] sm:$0xff] (!%p1185_p7), %v1186_v33 }
 0x176   : > { %758 = vst [vmem:[%s1958_s25 + $0x70] sm:$0xff] %v1186_v33  ;;  %759 = vst [vmem:[%s1958_s25 + $0x78] sm:$0xff] %v1186_v33 }
 0x177 PF: > { %s1206_s11 = sshll.u32 %s1657_s26, 6  ;;  %v1491_v34 = vld [vmem:[%s1929_s17] sm:$0xff]   ;;  %v1493_v44 = vld [vmem:[%s1929_s17 + $0x8] sm:$0xff]   ;;  %v1495_v46 = vld [vmem:[%s1929_s17 + $0x10] sm:$0xff]   ;;  %s2226_s26 = sld [smem:[#allocation11_spill]] }
 0x178   : > { %s2036_s30 = scalar_lea.vmem [#allocation2], %s1206_s11  ;;  %1322 = vmatprep.mubr.bf16.mxu0 %v1491_v34  ;;  %v1492_v37 = vld [vmem:[%s1929_s17 + $0x20] sm:$0xff]   ;;  %v1494_v45 = vld [vmem:[%s1929_s17 + $0x28] sm:$0xff]   ;;  %v1496_v47 = vld [vmem:[%s1929_s17 + $0x30] sm:$0xff]   ;;  %s996_s16 = sshll.u32 %s1958_s25, 4  ;;  %s2087_s16 = int_to_ptr.vmem [resolvable:$true] %s996_s16 }
 0x179   : > { %v795_v35 = vld [vmem:[%s2036_s30] sm:$0xff]  ;;  %v796_v36 = vld [vmem:[%s2036_s30 + $0x8] sm:$0xff]  ;;  %v797_v38 = vld [vmem:[%s2036_s30 + $0x10] sm:$0xff]  ;;  %1330 = vmatprep.mubr.bf16.mxu1 %v1492_v37  ;;  %s2228_s14 = sld [smem:[#allocation26_spill]]  ;;  %s2229_s12 = sand.u32 1, %s1629_s19  }
 0x17a   : > { %1306 = vmatprep.subr.bf16.mxu0 %v795_v35  ;;  %1340 = vmatprep.subr.bf16.mxu1 %v795_v35  ;;  %v798_v39 = vld [vmem:[%s2036_s30 + $0x18] sm:$0xff]  ;;  %v799_v40 = vld [vmem:[%s2036_s30 + $0x20] sm:$0xff]  ;;  %v800_v41 = vld [vmem:[%s2036_s30 + $0x28] sm:$0xff]  ;;  %s2097_s4 = scalar_lea.sflag [#allocation6], %s2229_s12  ;;  %s1527_s15 = scalar_lea.vmem %s2087_s16, 2048 }
 0x17b   : > { %1307 = vmatpush3.bf16.msra.mxu0 %v795_v35  ;;  %1348 = vmatpush3.bf16.msra.mxu1 %v795_v35  ;;  %v801_v42 = vld [vmem:[%s2036_s30 + $0x30] sm:$0xff]  ;;  %v802_v43 = vld [vmem:[%s2036_s30 + $0x38] sm:$0xff]  ;;  %v760_v52 = vld [vmem:[%s1958_s25] sm:$0xff]  ;;  %p1528_p2 = scmp.ne.s32.totalorder %s2087_s16, %s1527_s15  ;;  %p2230_p3 = scmp.ne.s32.totalorder %s2216_s5, 0 }
 0x17c   : > { %1308 = vmatprep.subr.bf16.mxu0 %v796_v36  ;;  %1341 = vmatprep.subr.bf16.mxu1 %v796_v36  ;;  %v1497_v48 = vld [vmem:[%s1929_s17 + $0x18] sm:$0xff]   ;;  %v762_v50 = vld [vmem:[%s1958_s25 + $0x10] sm:$0xff]  ;;  %v768_v53 = vld [vmem:[%s1958_s25 + $0x40] sm:$0xff]  ;;  %s1687_s28 = smov [#allocation7]  }
 0x17d   : > { %v1498_v49 = vld [vmem:[%s1929_s17 + $0x38] sm:$0xff]   ;;  %v770_v51 = vld [vmem:[%s1958_s25 + $0x50] sm:$0xff]  ;;  %v761_v62 = vld [vmem:[%s1958_s25 + $0x8] sm:$0xff]  ;;  %s2227_s17 = sld [smem:[#allocation12_spill]]  ;;  %s1207_s24 = sshll.u32 %s2226_s26, 5 }
 0x17e   : > { %v763_v56 = vld [vmem:[%s1958_s25 + $0x18] sm:$0xff]  ;;  %v769_v63 = vld [vmem:[%s1958_s25 + $0x48] sm:$0xff]  ;;  %v766_v10 = vld [vmem:[%s1958_s25 + $0x30] sm:$0xff]  ;;  %p1529_p8 = pnand %p1528_p2, %p2230_p3  ;;  %s1531_s2 = sshll.u32 %s1687_s28, 4  ;;  %s1532_s2 = int_to_ptr.vmem [resolvable:$false] %s1531_s2 }
 0x17f   : > { %1309 = vmatpush3.bf16.msra.mxu0 %v796_v36  ;;  %1349 = vmatpush3.bf16.msra.mxu1 %v796_v36  ;;  %v771_v57 = vld [vmem:[%s1958_s25 + $0x58] sm:$0xff]  ;;  %v774_v11 = vld [vmem:[%s1958_s25 + $0x70] sm:$0xff]  ;;  %v764_v12 = vld [vmem:[%s1958_s25 + $0x20] sm:$0xff]  ;;  %s1533_s29 = scalar_lea.vmem %s1532_s2, 4096  ;;  %p1534_p9 = scmp.lt.s32.totalorder %s2087_s16, %s1532_s2 }
 0x180   : > { %1310 = vmatprep.subr.bf16.mxu0 %v797_v38  ;;  %1342 = vmatprep.subr.bf16.mxu1 %v797_v38  ;;  %v772_v13 = vld [vmem:[%s1958_s25 + $0x60] sm:$0xff]  ;;  %v767_v16 = vld [vmem:[%s1958_s25 + $0x38] sm:$0xff]  ;;  %v765_v22 = vld [vmem:[%s1958_s25 + $0x28] sm:$0xff]  ;;  %p1530_p4 = pneg %p1529_p8  ;;  %p1535_p11 = scmp.lt.s32.totalorder %s1533_s29, %s1527_s15 }
 0x181   : > { %v775_v17 = vld [vmem:[%s1958_s25 + $0x78] sm:$0xff]  ;;  %v773_v23 = vld [vmem:[%s1958_s25 + $0x68] sm:$0xff] }
 0x182   : > { %p1536_p13 = por %p1535_p11, %p1534_p9 }
 0x183   : > { %1311 = vmatpush3.bf16.msra.mxu0 %v797_v38  ;;  %1350 = vmatpush3.bf16.msra.mxu1 %v797_v38  ;;  %s993_s8 = sadd.s32 %s2227_s17, %s1207_s24 }
 0x184   : > { %1312 = vmatprep.subr.bf16.mxu0 %v798_v39  ;;  %1343 = vmatprep.subr.bf16.mxu1 %v798_v39  ;;  %s1200_s13 = sshll.u32 %s993_s8, 7  ;;  %p1537_p10 = pnand %p1536_p13, %p1530_p4 }
 0x185   : > { %s2083_s0 = scalar_lea.hbm %s2228_s14, %s1200_s13 }
 0x187   : > { %1313 = vmatpush3.bf16.msra.mxu0 %v798_v39  ;;  %1351 = vmatpush3.bf16.msra.mxu1 %v798_v39 }
 0x188   : > { %1314 = vmatprep.subr.bf16.mxu0 %v799_v40  ;;  %1344 = vmatprep.subr.bf16.mxu1 %v799_v40 }
 0x18b   : > { %1315 = vmatpush3.bf16.msra.mxu0 %v799_v40  ;;  %1352 = vmatpush3.bf16.msra.mxu1 %v799_v40 }
 0x18c   : > { %1316 = vmatprep.subr.bf16.mxu0 %v800_v41  ;;  %1345 = vmatprep.subr.bf16.mxu1 %v800_v41 }
 0x18f   : > { %1317 = vmatpush3.bf16.msra.mxu0 %v800_v41  ;;  %1353 = vmatpush3.bf16.msra.mxu1 %v800_v41 }
 0x190   : > { %1318 = vmatprep.subr.bf16.mxu0 %v801_v42  ;;  %1346 = vmatprep.subr.bf16.mxu1 %v801_v42 }
 0x193   : > { %1319 = vmatpush3.bf16.msra.mxu0 %v801_v42  ;;  %1354 = vmatpush3.bf16.msra.mxu1 %v801_v42 }
 0x194   : > { %1320 = vmatprep.subr.bf16.mxu0 %v802_v43  ;;  %1347 = vmatprep.subr.bf16.mxu1 %v802_v43 }
 0x197   : > { %1321 = vmatpush3.bf16.msra.mxu0 %v802_v43  ;;  %1355 = vmatpush3.bf16.msra.mxu1 %v802_v43 }
 0x19a   : > { %1323 = vmatmul.mubr.bf16.vlgmr.msra.gmra.mrb[0].mxu0 %v1493_v44  ;;  %1331 = vmatmul.mubr.bf16.vlgmr.msra.gmra.mrb[0].mxu1 %v1494_v45 }
 0x19b   : > { %1326 = vmatprep.mubr.bf16.mxu0 %v1495_v46  ;;  %1334 = vmatprep.mubr.bf16.mxu1 %v1496_v47 }
 0x1a2   : > { %1327 = vmatmul.mubr.bf16.gmra.mrb[4].mxu0 %v1497_v48  ;;  %1335 = vmatmul.mubr.bf16.gmra.mrb[4].mxu1 %v1498_v49 }
 0x26d   : > { %v1324_v54 = vpop.f32.mrb[0].mxu0  ;;  %v1332_v55 = vpop.f32.mrb[0].mxu1 }
 0x26e   : > { %v950_v58 = vadd.f32 %v1324_v54, %v762_v50  ;;  %v958_v59 = vadd.f32 %v1332_v55, %v770_v51  ;;  %v885_v60 = vpop.f32.mrb[1].mxu0  ;;  %v917_v61 = vpop.f32.mrb[1].mxu1 }
 0x26f   : > { %v948_v0 = vadd.f32 %v885_v60, %v760_v52  ;;  %v956_v1 = vadd.f32 %v917_v61, %v768_v53  ;;  %v1325_v2 = vpop.f32.mrb[2].mxu0  ;;  %v1333_v3 = vpop.f32.mrb[2].mxu1 }
 0x270   : > { %966 = vst [vmem:[%s1958_s25 + $0x10] sm:$0xff] %v950_v58  ;;  %974 = vst [vmem:[%s1958_s25 + $0x50] sm:$0xff] %v958_v59  ;;  %v951_v4 = vadd.f32 %v1325_v2, %v763_v56  ;;  %v959_v5 = vadd.f32 %v1333_v3, %v771_v57  ;;  %v888_v6 = vpop.f32.mrb[3].mxu0  ;;  %v920_v7 = vpop.f32.mrb[3].mxu1 }
 0x271   : > { %964 = vst [vmem:[%s1958_s25] sm:$0xff] %v948_v0  ;;  %972 = vst [vmem:[%s1958_s25 + $0x40] sm:$0xff] %v956_v1  ;;  %v949_v8 = vadd.f32 %v888_v6, %v761_v62  ;;  %v957_v9 = vadd.f32 %v920_v7, %v769_v63 }
 0x272   : > { %967 = vst [vmem:[%s1958_s25 + $0x18] sm:$0xff] %v951_v4  ;;  %975 = vst [vmem:[%s1958_s25 + $0x58] sm:$0xff] %v959_v5 }
 0x273   : > { %965 = vst [vmem:[%s1958_s25 + $0x8] sm:$0xff] %v949_v8  ;;  %973 = vst [vmem:[%s1958_s25 + $0x48] sm:$0xff] %v957_v9 }
 0x275   : > { %v1328_v14 = vpop.f32.mrb[4].mxu0  ;;  %v1336_v15 = vpop.f32.mrb[4].mxu1 }
 0x276   : > { %v954_v18 = vadd.f32 %v1328_v14, %v766_v10  ;;  %v962_v19 = vadd.f32 %v1336_v15, %v774_v11  ;;  %v901_v20 = vpop.f32.mrb[5].mxu0  ;;  %v933_v21 = vpop.f32.mrb[5].mxu1 }
 0x277   : > { %v952_v24 = vadd.f32 %v901_v20, %v764_v12  ;;  %v960_v25 = vadd.f32 %v933_v21, %v772_v13  ;;  %v1329_v26 = vpop.f32.mrb[6].mxu0  ;;  %v1337_v27 = vpop.f32.mrb[6].mxu1 }
 0x278   : > { %970 = vst [vmem:[%s1958_s25 + $0x30] sm:$0xff] %v954_v18  ;;  %978 = vst [vmem:[%s1958_s25 + $0x70] sm:$0xff] %v962_v19  ;;  %v955_v28 = vadd.f32 %v1329_v26, %v767_v16  ;;  %v963_v29 = vadd.f32 %v1337_v27, %v775_v17  ;;  %v904_v30 = vpop.f32.mrb[7].mxu0  ;;  %v936_v31 = vpop.f32.mrb[7].mxu1 }
 0x279   : > { %968 = vst [vmem:[%s1958_s25 + $0x20] sm:$0xff] %v952_v24  ;;  %976 = vst [vmem:[%s1958_s25 + $0x60] sm:$0xff] %v960_v25  ;;  %v953_v32 = vadd.f32 %v904_v30, %v765_v22  ;;  %v961_v33 = vadd.f32 %v936_v31, %v773_v23 }
 0x27a   : > { %971 = vst [vmem:[%s1958_s25 + $0x38] sm:$0xff] %v955_v28  ;;  %979 = vst [vmem:[%s1958_s25 + $0x78] sm:$0xff] %v963_v29 }
 0x27b   : > { %969 = vst [vmem:[%s1958_s25 + $0x28] sm:$0xff] %v953_v32  ;;  %977 = vst [vmem:[%s1958_s25 + $0x68] sm:$0xff] %v961_v33 }
 0x27c   : > { %1540 = shalt.err (!%p1537_p10)
}
 0x27d   : > { %s1541_s25 = scalar_lea.hbm %s2083_s0, 2048  ;;  %s1545_s9 = scalar_lea.hbm %s2228_s14, 8192 }
 0x27e   : > { %p1542_p0 = scmp.ne.s32.totalorder %s2083_s0, %s1541_s25  ;;  %p1546_p5 = scmp.lt.u32.totalorder %s2083_s0, %s2228_s14 }
 0x27f   : > { %p1547_p12 = scmp.lt.u32.totalorder %s1545_s9, %s1541_s25  ;;  %p1549_p2 = scmp.lt.u32.totalorder %s1541_s25, %s2083_s0 }
 0x280   : > { %p1543_p1 = pnand %p1542_p0, %p2230_p3 }
 0x281   : > { %p1548_p7 = por %p1547_p12, %p1546_p5 }
 0x282   : > { %p1544_p6 = pneg %p1543_p1 }
 0x283   : > { %p1550_p8 = por %p1549_p2, %p1548_p7 }
 0x285   : > { %p1551_p4 = pnand %p1550_p8, %p1544_p6 }
 0x287   : > { %1554 = shalt.err (!%p1551_p4)
}
 0x288   : > { %s1688_s26 = smov 128   ;;  %s1689_s17 = smov 256  }
 0x289   : > { %s1690_s24 = smov 8  }
 0x28a   : > { %1358 = dma.vmem_to_hbm [thread:$0]  (%p2230_p3), %s2087_s16, 2048, %s2083_s0, %s2097_s4, %s1688_s26, %s1689_s17, %s1690_s24  }
 0x28b PF: > { %p1364_p9 = scmp.ge.s32.totalorder %s1681_s7, 2  ;;  %s1011_s8 = sand.u32 1, %s1625_s18  }
 0x28c   : > { %p2231_p11 = scmp.ne.s32.totalorder %s2217_s27, 0  ;;  %s1012_s13 = scalar_lea.sflag [#allocation6], %s1011_s8 }
 0x28e   : > { %p1361_p13 = pnand %p1364_p9, %p2231_p11 }
 0x290   : > { %1620 = dma.done.wait (!%p1361_p13), %s1012_s13, 2048  }
 0x291   : > { %1622 = vsyncadd (!%p1361_p13), %s1012_s13, 4294965248  ;;  %s21_s7 = sadd.s32 1, %s1681_s7   ;;  %s2233_s5 = sld [smem:[#allocation20_spill]] }
 0x292   : > { %p2126_p10 = scmp.ge.s32.totalorder %s21_s7, 10   ;;  %s2234_s24 = sld [smem:[#allocation10_spill]] }
 0x293   : > { %s2235_s25 = sld [smem:[#allocation19_spill]]  ;;  %s2236_s26 = sld [smem:[#allocation13_spill]] }
 0x294   : > { %s2237_s27 = sld [smem:[#allocation14_spill]]  ;;  %s2238_s28 = sld [smem:[#allocation15_spill]] }
 0x295   : > { %s2239_s29 = sld [smem:[#allocation16_spill]]  ;;  %s2240_s30 = sld [smem:[#allocation17_spill]] }
 0x296   : > { %s2241_s6 = sld [smem:[#allocation18_spill]]  ;;  %s2242_s18 = smov %s1629_s19 }
 0x297   : > { %s2243_s19 = smov %s1633_s20  ;;  %s2244_s20 = smov %s1846_s21 }
 0x298   : > { %s2245_s21 = smov %s1641_s22  ;;  %s2246_s22 = smov %s1645_s23 }
 0x299   : > { %s2247_s23 = smov %s2233_s5  ;;  %20 = sbr.rel (!%p2126_p10) target bundleno = 18 (0x12), region = 153 }
 0x2a0   :  { %1017 = vsyncpa [#allocation5], 1 }
 0x2a1   :  { %1019 = vsyncpa [#allocation5 + $0x1], 1 }
 0x2a2   :  { %1020 = vsyncpa [#allocation6], 1 }
 0x2a3   :  { %1022 = vsyncpa [#allocation6 + $0x1], 1 }

</bundles_post_ra>
